<compile_context>
chip_gen: v5e
topology: v5e:2x2
jax: 0.10.0
libtpu: 0.0.40
codegen_flags: <defaults>
</compile_context>

<pallas_src>
import functools

import jax
import jax.numpy as jnp
import numpy as np
from jax.experimental import pallas as pl
from jax.experimental.pallas import tpu as pltpu


def _round_up(x, m):
    return ((x + m - 1) // m) * m


def _vmem_limit_bytes():
    """Per-generation VMEM limit: ~75% of physical, capped; 32 MiB fallback."""
    try:
        cap = getattr(pltpu.get_tpu_info(), "vmem_capacity_bytes", None)
        if cap:
            return int(min(cap * 3 // 4, 100 * 1024 * 1024))
    except Exception:
        pass
    return 32 * 1024 * 1024


def _pick_row_tile(n_pad):
    """Large row tile for the memory-bound projection / pool kernels."""
    for t in (1024, 512, 256, 128):
        if n_pad % t == 0:
            return t
    return n_pad


# --------------------------------------------------------------------------
# Kernel 1: per-layer projections (memory-bound, big row tiles)
#   targets = h @ [Wk | Wskip]            (needed per target row i)
#   sources = h @ [Wq | Wv] + [bk+bq|bv]  (needed per source row j)
# --------------------------------------------------------------------------
def _proj_kernel(h_ref, wt_ref, ws_ref, bs_ref, tgt_ref, src_ref):
    h = h_ref[...]
    tgt_ref[...] = jnp.dot(h, wt_ref[...], preferred_element_type=jnp.float32)
    src_ref[...] = (
        jnp.dot(h, ws_ref[...], preferred_element_type=jnp.float32) + bs_ref[...]
    )


def _project(h, w_tgt, w_src, b_src, *, tm, vmem_limit):
    n_pad, c_in = h.shape
    two_h = w_tgt.shape[1]
    return pl.pallas_call(
        _proj_kernel,
        out_shape=(
            jax.ShapeDtypeStruct((n_pad, two_h), jnp.float32),
            jax.ShapeDtypeStruct((n_pad, two_h), jnp.float32),
        ),
        grid_spec=pltpu.PrefetchScalarGridSpec(
            num_scalar_prefetch=0,
            grid=(n_pad // tm,),
            in_specs=[
                pl.BlockSpec((tm, c_in), lambda i: (i, 0)),
                pl.BlockSpec((c_in, two_h), lambda i: (0, 0)),
                pl.BlockSpec((c_in, two_h), lambda i: (0, 0)),
                pl.BlockSpec((1, two_h), lambda i: (0, 0)),
            ],
            out_specs=[
                pl.BlockSpec((tm, two_h), lambda i: (i, 0)),
                pl.BlockSpec((tm, two_h), lambda i: (i, 0)),
            ],
        ),
        compiler_params=pltpu.CompilerParams(
            dimension_semantics=("parallel",),
            vmem_limit_bytes=vmem_limit,
        ),
    )(h, w_tgt, w_src, b_src)


# --------------------------------------------------------------------------
# Kernel 2: tiled, lane-dense, block-sparse gated aggregation + skip + ReLU
#   grid = (target blocks i [parallel], source blocks j [arbitrary/reduction])
# --------------------------------------------------------------------------
def _agg_kernel(mask_ref, tgt_ref, srcT_ref, adj_ref, bias_ref, out_ref, acc_ref,
                *, hidden):
    i = pl.program_id(0)
    j = pl.program_id(1)
    nb_j = pl.num_programs(1)

    @pl.when(j == 0)
    def _():
        acc_ref[...] = jnp.zeros_like(acc_ref)

    # Block-sparse skip: only touch the VPU/EUP if this adjacency tile has edges.
    @pl.when(mask_ref[i * nb_j + j] > 0)
    def _():
        tgt = tgt_ref[...]            # (tm, 2H): [k | skip] of target rows
        srcT = srcT_ref[...]          # (2H, tn): [q ; v], source axis on lanes
        adj = adj_ref[...]            # (tm, tn): adj[i, j] = multiplicity of j -> i

        k = tgt[:, :hidden]           # (tm, H)
        q = srcT[:hidden, :]          # (H, tn)
        v = srcT[hidden:, :]          # (H, tn)

        # Lane-dense (tm, H, tn): tn stays on lanes, so adj broadcasts without a
        # lane->sublane relayout and the reduce over sources is a lane reduce.
        gate = jax.nn.sigmoid(k[:, :, None] + q[None, :, :])        # (tm, H, tn)
        acc_ref[...] += jnp.sum(gate * (adj[:, None, :] * v[None, :, :]), axis=-1)

    @pl.when(j == nb_j - 1)
    def _():
        skip = tgt_ref[:, hidden:]
        out_ref[...] = jnp.maximum(acc_ref[...] + skip + bias_ref[...], 0.0)


def _aggregate(tile_mask, tgt, src_t, adj, bias, *, hidden, tm, tn, vmem_limit):
    n_pad = adj.shape[0]
    two_h = tgt.shape[1]
    kernel = functools.partial(_agg_kernel, hidden=hidden)
    cost = pl.CostEstimate(
        flops=4 * n_pad * n_pad * hidden,
        transcendentals=n_pad * n_pad * hidden,
        bytes_accessed=4 * (n_pad * n_pad
                            + (n_pad // tm) * n_pad * 2 * hidden
                            + n_pad * 2 * hidden
                            + n_pad * hidden),
    )
    return pl.pallas_call(
        kernel,
        out_shape=jax.ShapeDtypeStruct((n_pad, hidden), jnp.float32),
        grid_spec=pltpu.PrefetchScalarGridSpec(
            num_scalar_prefetch=1,                      # tile occupancy mask -> SMEM
            grid=(n_pad // tm, n_pad // tn),
            in_specs=[
                pl.BlockSpec((tm, two_h), lambda i, j, m: (i, 0)),   # targets [k|skip]
                pl.BlockSpec((two_h, tn), lambda i, j, m: (0, j)),   # sources [q;v]^T
                pl.BlockSpec((tm, tn), lambda i, j, m: (i, j)),      # adjacency tile
                pl.BlockSpec((1, hidden), lambda i, j, m: (0, 0)),   # conv bias
            ],
            out_specs=pl.BlockSpec((tm, hidden), lambda i, j, m: (i, 0)),
            scratch_shapes=[pltpu.VMEM((tm, hidden), jnp.float32)],
        ),
        compiler_params=pltpu.CompilerParams(
            dimension_semantics=("parallel", "arbitrary"),
            vmem_limit_bytes=vmem_limit,
        ),
        cost_estimate=cost,
    )(tile_mask, tgt, src_t, adj, bias)


# --------------------------------------------------------------------------
# Kernel 3: tiled global mean pool + final Linear (lane-dense padded classes)
#   grid over node blocks with a (g_pad, hidden) accumulator
# --------------------------------------------------------------------------
def _pool_fc_kernel(pool_ref, h_ref, w_ref, b_ref, out_ref, acc_ref):
    t = pl.program_id(0)

    @pl.when(t == 0)
    def _():
        acc_ref[...] = jnp.zeros_like(acc_ref)

    acc_ref[...] += jnp.dot(pool_ref[...], h_ref[...],
                            preferred_element_type=jnp.float32)

    @pl.when(t == pl.num_programs(0) - 1)
    def _():
        out_ref[...] = (
            jnp.dot(acc_ref[...], w_ref[...], preferred_element_type=jnp.float32)
            + b_ref[...]
        )


def _pool_fc(pool, h, w_pad, b_pad, *, tile_n, vmem_limit):
    g_pad, n_pad = pool.shape
    hidden = h.shape[1]
    c_pad = w_pad.shape[1]
    return pl.pallas_call(
        _pool_fc_kernel,
        out_shape=jax.ShapeDtypeStruct((g_pad, c_pad), jnp.float32),
        grid_spec=pltpu.PrefetchScalarGridSpec(
            num_scalar_prefetch=0,
            grid=(n_pad // tile_n,),
            in_specs=[
                pl.BlockSpec((g_pad, tile_n), lambda t: (0, t)),
                pl.BlockSpec((tile_n, hidden), lambda t: (t, 0)),
                pl.BlockSpec((hidden, c_pad), lambda t: (0, 0)),
                pl.BlockSpec((1, c_pad), lambda t: (0, 0)),
            ],
            out_specs=pl.BlockSpec((g_pad, c_pad), lambda t: (0, 0)),
            scratch_shapes=[pltpu.VMEM((g_pad, hidden), jnp.float32)],
        ),
        compiler_params=pltpu.CompilerParams(
            dimension_semantics=("arbitrary",),
            vmem_limit_bytes=vmem_limit,
        ),
    )(pool, h, w_pad, b_pad)


# --------------------------------------------------------------------------
# Wrapper
# --------------------------------------------------------------------------
def res_gated_gcn_forward(x, edge_index, batch, params, num_graphs, num_classes):
    (wk1, bk1, wq1, bq1, wv1, bv1, ws1, b1,
     wk2, bk2, wq2, bq2, wv2, bv2, ws2, b2, wfc, bfc) = params

    n, c_in = x.shape
    hidden = wk1.shape[1]
    vmem_limit = _vmem_limit_bytes()

    # Aggregation tile sizes.  Small graphs: two target blocks (so the
    # "parallel" axis can span both v7x TensorCores) and one full source
    # block.  Large graphs: lane-dense tn=128 source blocks; shrink tm for
    # very wide hidden so the (tm, H, tn) intermediates fit v7x's 64 MiB VMEM.
    if n <= 128:
        n_pad = _round_up(n, 16)
        tm = max(8, n_pad // 2)
        tn = n_pad
    else:
        n_pad = _round_up(n, 128)
        tm = 64 if hidden >= 128 else 128
        tn = 128
    tm_proj = _pick_row_tile(n_pad)   # big row tiles for the mem-bound projections

    # Pad nodes; padded adj rows/cols and pool columns are zero, so padded
    # nodes contribute nothing to real outputs.
    x_pad = jnp.zeros((n_pad, c_in), jnp.float32).at[:n, :].set(x)
    src, dst = edge_index[0], edge_index[1]
    adj = jnp.zeros((n_pad, n_pad), jnp.float32).at[dst, src].add(1.0)
    # TODO(synk): stream adj as int8 / activations as bf16 (f32 accumulate), and
    # switch to an edge-list / padded-neighbor formulation (scalar-prefetch row
    # gather) for very large sparse graphs instead of the dense NxN adjacency.

    # Per-(i, j) adjacency-tile occupancy for block-sparse compute skipping.
    nb_i, nb_j = n_pad // tm, n_pad // tn
    tile_mask = (
        adj.reshape(nb_i, tm, nb_j, tn).sum(axis=(1, 3)) > 0
    ).astype(jnp.int32).reshape(-1)

    g_pad = _round_up(max(num_graphs, 1), 8)
    batch_pad = jnp.full((n_pad,), -1, jnp.int32).at[:n].set(batch.astype(jnp.int32))
    one_hot = (batch_pad[None, :]
               == jnp.arange(g_pad, dtype=jnp.int32)[:, None]).astype(jnp.float32)
    counts = jnp.maximum(one_hot.sum(axis=1, keepdims=True), 1.0)
    pool = one_hot / counts                                    # (g_pad, n_pad)

    # Split projections so the aggregation only streams what each side needs:
    # targets need [k | skip] (by i), sources need [q | v] (by j).  The k/q
    # biases fold into the query columns:
    #   sigmoid((x_i Wk + bk) + (x_j Wq + bq)) == sigmoid(k_i + (q_j + bk + bq)).
    def split(wk, bk, wq, bq, wv, bv, ws):
        w_tgt = jnp.concatenate([wk, ws], axis=1)
        w_src = jnp.concatenate([wq, wv], axis=1)
        b_src = jnp.concatenate([bk + bq, bv], axis=1)
        return w_tgt, w_src, b_src

    w_tgt1, w_src1, b_src1 = split(wk1, bk1, wq1, bq1, wv1, bv1, ws1)
    w_tgt2, w_src2, b_src2 = split(wk2, bk2, wq2, bq2, wv2, bv2, ws2)

    def layer(h, w_tgt, w_src, b_src, b_conv):
        tgt, src_rows = _project(h, w_tgt, w_src, b_src,
                                 tm=tm_proj, vmem_limit=vmem_limit)
        # Pre-transpose sources so aggregation source blocks arrive as
        # (2H, tn): the source axis lands on the 128-wide lane dimension.
        src_t = jnp.transpose(src_rows)
        return _aggregate(tile_mask, tgt, src_t, adj, b_conv,
                          hidden=hidden, tm=tm, tn=tn, vmem_limit=vmem_limit)

    h1 = layer(x_pad, w_tgt1, w_src1, b_src1, b1)
    h2 = layer(h1, w_tgt2, w_src2, b_src2, b2)

    # Global mean pool + classifier, classes padded to a lane-dense 128.
    c_pad = _round_up(num_classes, 128)
    wfc_pad = jnp.zeros((hidden, c_pad), jnp.float32).at[:, :num_classes].set(wfc)
    bfc_pad = jnp.zeros((1, c_pad), jnp.float32).at[:, :num_classes].set(bfc)

    out_pad = _pool_fc(pool, h2, wfc_pad, bfc_pad,
                       tile_n=tm_proj, vmem_limit=vmem_limit)
    return out_pad[:num_graphs, :num_classes]


# --------------------------------------------------------------------------
# Parameters / reference
# --------------------------------------------------------------------------
def init_params(key, in_channels, hidden_channels, num_classes):
    """Deterministic synthetic weights matching ResGatedGCN.__init__ shapes."""
    ks = jax.random.split(key, 10)

    def lin_w(k, fan_in, fan_out):
        return (jax.random.normal(k, (fan_in, fan_out), jnp.float32)
                / np.sqrt(float(fan_in)))

    def conv_params(k0, k1, k2, k3, cin, cout):
        wk = lin_w(k0, cin, cout); bk = jnp.zeros((1, cout), jnp.float32)
        wq = lin_w(k1, cin, cout); bq = jnp.zeros((1, cout), jnp.float32)
        wv = lin_w(k2, cin, cout); bv = jnp.zeros((1, cout), jnp.float32)
        ws = lin_w(k3, cin, cout)                      # lin_skip, bias=False
        b = jnp.zeros((1, cout), jnp.float32)          # conv bias
        return (wk, bk, wq, bq, wv, bv, ws, b)

    p1 = conv_params(ks[0], ks[1], ks[2], ks[3], in_channels, hidden_channels)
    p2 = conv_params(ks[4], ks[5], ks[6], ks[7], hidden_channels, hidden_channels)
    wfc = lin_w(ks[8], hidden_channels, num_classes)
    bfc = (jax.random.normal(ks[9], (1, num_classes), jnp.float32) * 0.01)
    return p1 + p2 + (wfc, bfc)


def reference_forward(x, edge_index, batch, params, num_graphs):
    """Pure-JAX reference with identical math (for verification)."""
    (wk1, bk1, wq1, bq1, wv1, bv1, ws1, b1,
     wk2, bk2, wq2, bq2, wv2, bv2, ws2, b2, wfc, bfc) = params
    n = x.shape[0]
    adj = jnp.zeros((n, n), jnp.float32).at[edge_index[1], edge_index[0]].add(1.0)

    def conv(h, wk, bk, wq, bq, wv, bv, ws, b):
        k = h @ wk + bk
        q = h @ wq + bq
        v = h @ wv + bv
        gate = jax.nn.sigmoid(k[:, None, :] + q[None, :, :])
        agg = (adj[:, :, None] * gate * v[None, :, :]).sum(axis=1)
        return agg + h @ ws + b

    h = jax.nn.relu(conv(x, wk1, bk1, wq1, bq1, wv1, bv1, ws1, b1))
    h = jax.nn.relu(conv(h, wk2, bk2, wq2, bq2, wv2, bv2, ws2, b2))
    one_hot = (batch[None, :] == jnp.arange(num_graphs, dtype=batch.dtype)[:, None])
    one_hot = one_hot.astype(jnp.float32)
    pool = one_hot / jnp.maximum(one_hot.sum(axis=1, keepdims=True), 1.0)
    return pool @ h @ wfc + bfc


if __name__ == "__main__":
    N = 16              # total nodes
    IN_C = 4            # in_channels
    HID = 32            # hidden_channels
    NUM_CLASSES = 3
    G = 2               # graphs in the batch

    key = jax.random.PRNGKey(0)
    k_x, k_params = jax.random.split(key)

    x = jax.random.normal(k_x, (N, IN_C), jnp.float32)

    # Two ring graphs of 8 nodes each (directed edges both ways).
    nodes_per_graph = N // G
    src_list, dst_list = [], []
    for g in range(G):
        off = g * nodes_per_graph
        for i in range(nodes_per_graph):
            j = (i + 1) % nodes_per_graph
            src_list += [off + i, off + j]
            dst_list += [off + j, off + i]
    edge_index = jnp.array([src_list, dst_list], dtype=jnp.int32)   # (2, E)
    batch = jnp.repeat(jnp.arange(G, dtype=jnp.int32), nodes_per_graph)

    params = init_params(k_params, IN_C, HID, NUM_CLASSES)

    out = res_gated_gcn_forward(x, edge_index, batch, params, G, NUM_CLASSES)
    out = jax.block_until_ready(out)

    ref = jax.block_until_ready(reference_forward(x, edge_index, batch, params, G))
    np.testing.assert_allclose(np.asarray(out), np.asarray(ref), rtol=2e-2, atol=2e-2)

    print("KERNEL_OK")
</pallas_src>

<mosaic_0001>
module attributes {stable_mosaic.version = 11 : i64} {
  func.func @_proj_kernel(%arg0: i32, %arg1: memref<16x4xf32, #tpu.memory_space<vmem>>, %arg2: memref<4x64xf32, #tpu.memory_space<vmem>>, %arg3: memref<4x64xf32, #tpu.memory_space<vmem>>, %arg4: memref<1x64xf32, #tpu.memory_space<vmem>>, %arg5: memref<16x64xf32, #tpu.memory_space<vmem>>, %arg6: memref<16x64xf32, #tpu.memory_space<vmem>>) attributes {dimension_semantics = [#tpu.dimension_semantics<parallel>], iteration_bounds = array<i64: 1>, scalar_prefetch = 0 : i64, scratch_operands = 0 : i64, tpu.core_type = #tpu.core_type<tc>, window_params = [{transform_indices = @transform_0, window_bounds = array<i64: 16, 4>}, {pipeline_mode = #tpu.pipeline_mode<synchronous>, transform_indices = @transform_1, window_bounds = array<i64: 4, 64>}, {pipeline_mode = #tpu.pipeline_mode<synchronous>, transform_indices = @transform_2, window_bounds = array<i64: 4, 64>}, {pipeline_mode = #tpu.pipeline_mode<synchronous>, transform_indices = @transform_3, window_bounds = array<i64: 1, 64>}, {transform_indices = @transform_4, window_bounds = array<i64: 16, 64>}, {transform_indices = @transform_5, window_bounds = array<i64: 16, 64>}]} {
    %c0 = arith.constant 0 : index
    %c0_0 = arith.constant 0 : index
    %0 = vector.load %arg1[%c0, %c0_0] : memref<16x4xf32, #tpu.memory_space<vmem>>, vector<16x4xf32>
    %c0_1 = arith.constant 0 : index
    %c0_2 = arith.constant 0 : index
    %1 = vector.load %arg2[%c0_1, %c0_2] : memref<4x64xf32, #tpu.memory_space<vmem>>, vector<4x64xf32>
    %cst = arith.constant dense<0.000000e+00> : vector<16x64xf32>
    %2 = tpu.matmul %0, %1, %cst {dimension_numbers = #tpu.dot_dimension_numbers<[1], [0], [0], [1], [0, 0, 1, 1], [], []>} : vector<16x4xf32>, vector<4x64xf32>, vector<16x64xf32> -> vector<16x64xf32>
    %c0_3 = arith.constant 0 : index
    %c0_4 = arith.constant 0 : index
    %3 = vector.load %arg5[%c0_3, %c0_4] : memref<16x64xf32, #tpu.memory_space<vmem>>, vector<16x64xf32>
    tpu.vector_store %arg5[%c0_3, %c0_4], %2 {strides = array<i32>} : memref<16x64xf32, #tpu.memory_space<vmem>>, vector<16x64xf32>,
    %c0_5 = arith.constant 0 : index
    %c0_6 = arith.constant 0 : index
    %4 = vector.load %arg3[%c0_5, %c0_6] : memref<4x64xf32, #tpu.memory_space<vmem>>, vector<4x64xf32>
    %cst_7 = arith.constant dense<0.000000e+00> : vector<16x64xf32>
    %5 = tpu.matmul %0, %4, %cst_7 {dimension_numbers = #tpu.dot_dimension_numbers<[1], [0], [0], [1], [0, 0, 1, 1], [], []>} : vector<16x4xf32>, vector<4x64xf32>, vector<16x64xf32> -> vector<16x64xf32>
    %c0_8 = arith.constant 0 : index
    %c0_9 = arith.constant 0 : index
    %6 = vector.load %arg4[%c0_8, %c0_9] : memref<1x64xf32, #tpu.memory_space<vmem>>, vector<1x64xf32>
    %7 = vector.broadcast %6 : vector<1x64xf32> to vector<16x64xf32>
    %8 = arith.addf %5, %7 : vector<16x64xf32>
    %c0_10 = arith.constant 0 : index
    %c0_11 = arith.constant 0 : index
    %9 = vector.load %arg6[%c0_10, %c0_11] : memref<16x64xf32, #tpu.memory_space<vmem>>, vector<16x64xf32>
    tpu.vector_store %arg6[%c0_10, %c0_11], %8 {strides = array<i32>} : memref<16x64xf32, #tpu.memory_space<vmem>>, vector<16x64xf32>,
    return
  }
  func.func @transform_0(%arg0: i32) -> (i32, i32) {
    %c0_i32 = arith.constant 0 : i32
    %c0_i32_0 = arith.constant 0 : i32
    return %arg0, %c0_i32 : i32, i32
  }
  func.func @transform_1(%arg0: i32) -> (i32, i32) {
    %c0_i32 = arith.constant 0 : i32
    %c0_i32_0 = arith.constant 0 : i32
    %c0_i32_1 = arith.constant 0 : i32
    return %c0_i32, %c0_i32_0 : i32, i32
  }
  func.func @transform_2(%arg0: i32) -> (i32, i32) {
    %c0_i32 = arith.constant 0 : i32
    %c0_i32_0 = arith.constant 0 : i32
    %c0_i32_1 = arith.constant 0 : i32
    return %c0_i32, %c0_i32_0 : i32, i32
  }
  func.func @transform_3(%arg0: i32) -> (i32, i32) {
    %c0_i32 = arith.constant 0 : i32
    %c0_i32_0 = arith.constant 0 : i32
    %c0_i32_1 = arith.constant 0 : i32
    return %c0_i32, %c0_i32_0 : i32, i32
  }
  func.func @transform_4(%arg0: i32) -> (i32, i32) {
    %c0_i32 = arith.constant 0 : i32
    %c0_i32_0 = arith.constant 0 : i32
    return %arg0, %c0_i32 : i32, i32
  }
  func.func @transform_5(%arg0: i32) -> (i32, i32) {
    %c0_i32 = arith.constant 0 : i32
    %c0_i32_0 = arith.constant 0 : i32
    return %arg0, %c0_i32 : i32, i32
  }
}

</mosaic_0001>

<bundles_post_ra>
// kernel: tpu_custom_call.1
= control target key start
LH: loop header
LB: loop body
LE: loop exit
PB: predicated region body
PF: predicated region fallthrough
CT: control target
= control target key end

     0   :  { %11 = vsyncpa [#allocation3], 0  ;;  %vm31_vm0 = vcmask 1043456   ;;  %vm24_vm1 = vcmask 31744   ;;  %s254_s0 = inlined_call_operand.vmem [shape: f32[16,4], index: 0, kind: input, shape index: {}]   ;;  %s255_s1 = inlined_call_operand.vmem [shape: f32[4,64], index: 1, kind: input, shape index: {}]   ;;  %s256_s2 = inlined_call_operand.vmem [shape: f32[4,64], index: 2, kind: input, shape index: {}]   ;;  %s257_s3 = inlined_call_operand.vmem [shape: f32[1,64], index: 3, kind: input, shape index: {}]   ;;  %s258_s4 = inlined_call_operand.hbm [shape: f32[16,64], index: 4, kind: output, shape index: {0}]   ;;  %s259_s5 = inlined_call_operand.hbm [shape: f32[16,64], index: 5, kind: output, shape index: {1}]  }
   0x1   :  { %v61_v0 = vld [vmem:[%s256_s2] sm:$0xf]  ;;  %v22_v1 = vld [vmem:[%s254_s0 + $0x8] sm:$0xff] }
   0x2   :  { %v21_v2 = vld [vmem:[%s254_s0] sm:$0xff]  ;;  %137 = vmatpush.msk.msra.mxu3 %vm31_vm0, %v61_v0  ;;  %133 = vmatpush.msk.msra.mxu1 %vm31_vm0, %v61_v0 }
   0x3   :  { %v23_v3 = vld [vmem:[%s255_s1] sm:$0xf]  ;;  %135 = vmatmul.msk.f32.vlgmr.msra.gmra.mxu3 %vm24_vm1, %v22_v1 }
   0x4   :  { %136 = vmatpush.msk.msra.mxu2 %vm31_vm0, %v23_v3 }
   0x5   :  { %12 = vsyncpa [#allocation5], 0  ;;  %132 = vmatmul.msk.f32.vlgmr.msra.gmra.mxu2 %vm24_vm1, %v22_v1  ;;  %134 = vmatmul.msk.f32.vlgmr.msra.gmra.mxu1 %vm24_vm1, %v21_v2  ;;  %v142_v4 = vld [vmem:[%s257_s3] ss:$0 sm:$0xff]  ;;  %vm58_vm2 = vcmask 523264   ;;  %s195_s0 = smov [#allocation2]  }
   0x6   :  { %130 = vmatpush.msk.msra.mxu0 %vm31_vm0, %v23_v3  ;;  %s98_s27 = sshll.u32 %s195_s0, 4  ;;  %s100_s1 = sshll.u32 %s258_s4, 4  ;;  %s99_s27 = int_to_ptr.vmem [resolvable:$true] %s98_s27  ;;  %s101_s1 = int_to_ptr.hbm [resolvable:$true] %s100_s1 }
   0x7   :  { %131 = vmatmul.msk.f32.vlgmr.msra.gmra.mxu0 %vm24_vm1, %v21_v2  ;;  %s196_s30 = smov [#allocation4]   ;;  %s113_s9 = sshll.u32 %s259_s5, 4  ;;  %s114_s9 = int_to_ptr.hbm [resolvable:$true] %s113_s9 }
   0x8   :  { %s111_s6 = sshll.u32 %s196_s30, 4  ;;  %s197_s3 = smov 128   ;;  %s112_s6 = int_to_ptr.vmem [resolvable:$true] %s111_s6 }
   0x9   :  { %s198_s4 = smov 8  }
  0x82   :  { %v86_v5 = vpop.f32.mrf.mxu1 }
  0x83   :  { %v87_v6 = vadd.f32 %v142_v4, %v86_v5 }
  0x84   :  { %v52_v7 = vpop.f32.mrf.mxu0 }
  0x85   :  { %92 = vst.msk [vmem:[#allocation4] sm:$0xff] %vm58_vm2, %v87_v6 }
  0x86   :  { %59 = vst.msk [vmem:[#allocation2] sm:$0xff] %vm58_vm2, %v52_v7  ;;  %v89_v8 = vpop.f32.mrf.mxu3 }
  0x87   :  { %v90_v9 = vadd.f32 %v142_v4, %v89_v8 }
  0x88   :  { %v55_v10 = vpop.f32.mrf.mxu2 }
  0x89   :  { %60 = vst.msk [vmem:[#allocation2 + $0x8] sm:$0xff] %vm58_vm2, %v55_v10 }
  0x8a   :  { %93 = vst.msk [vmem:[#allocation4 + $0x8] sm:$0xff] %vm58_vm2, %v90_v9  ;;  %106 = dma.vmem_to_hbm [thread:$0]  %s99_s27, 256, %s101_s1, [#allocation3], %s197_s3, %s197_s3, %s198_s4  }
  0x8b   :  { %119 = dma.vmem_to_hbm [thread:$0]  %s112_s6, 256, %s114_s9, [#allocation5], %s197_s3, %s197_s3, %s198_s4  }
  0x8c   :  { %191 = dma.done.wait [#allocation3], 256  }
  0x8d   :  { %192 = vsyncadd [#allocation3], 4294967040 }
  0x8e   :  { %193 = dma.done.wait [#allocation5], 256  }
  0x8f   :  { %194 = vsyncadd [#allocation5], 4294967040 }
  0x90   :  { %128 = vsyncpa [#allocation3], 1 }
  0x91   :  { %129 = vsyncpa [#allocation5], 1 }

</bundles_post_ra>
